<compile_context>
chip_gen: v7x
topology: tpu7x:2x2x1
jax: 0.10.0
libtpu: 0.0.40
codegen_flags: <defaults>
</compile_context>

<pallas_src>
import functools

import jax
import jax.numpy as jnp
from jax.experimental import pallas as pl
from jax.experimental.pallas import tpu as pltpu


def _round_up(x, m):
    return (x + m - 1) // m * m


def _actor_fused_kernel(user_ids_ref, item_ids_ref,                     # SMEM (scalar prefetch)
                        user_tbl_ref, item_tbl_ref,                     # VMEM, resident
                        w1_ref, b1_ref, w2_ref, b2_ref, w3_ref, b3_ref,  # VMEM, resident
                        state_ref, action_ref,                          # VMEM output blocks
                        ustage, istage, xbuf,                           # VMEM scratch
                        *, tm, n_seq, eu, ei, d, d_pad, apply_tanh):
    """One batch tile: in-VMEM gather, row-major state assembly, fused MLP."""
    f32 = jnp.float32
    base = pl.program_id(0) * tm

    # --- Gather: tm user rows + tm*n_seq item rows from the VMEM-resident
    # tables into slot-major staging buffers (dynamic-sublane, lane-offset-0
    # stores only; no DMAs, no semaphores).
    @pl.loop(0, tm)
    def _gather(r):
        row = base + r
        uid = user_ids_ref[row]
        ustage[pl.ds(r, 1), :] = user_tbl_ref[pl.ds(uid, 1), :]
        for j in range(n_seq):
            iid = item_ids_ref[row * n_seq + j]
            istage[pl.ds(j * tm + r, 1), :] = item_tbl_ref[pl.ds(iid, 1), :]

    # --- Assemble the row-major, lane-padded state tile (tm, d_pad):
    # [user | item_0 | ... | item_{n_seq-1} | 0-pad].  Static block copies only.
    xbuf[:, 0:eu] = ustage[...].astype(f32)
    for j in range(n_seq):
        col = eu + j * ei
        xbuf[:, col:col + ei] = istage[j * tm:(j + 1) * tm, :].astype(f32)
    if d_pad > d:
        xbuf[:, d:d_pad] = jnp.zeros((tm, d_pad - d), f32)

    x = xbuf[...]
    state_ref[...] = x.astype(state_ref.dtype)          # single lane-dense store

    # --- MLP: one MXU matmul per layer, f32 accumulate, relu on the VPU.
    h = jnp.maximum(
        jnp.dot(x, w1_ref[...], preferred_element_type=f32) + b1_ref[...], 0.0)
    h = jnp.maximum(
        jnp.dot(h, w2_ref[...], preferred_element_type=f32) + b2_ref[...], 0.0)
    act = jnp.dot(h, w3_ref[...], preferred_element_type=f32) + b3_ref[...]
    if apply_tanh:
        act = jnp.tanh(act)
    action_ref[...] = act.astype(action_ref.dtype)


def _choose_tile(batch, tile_m):
    """Pick a batch tile (multiple of 8); keep >=2 grid steps for megacore."""
    b8 = _round_up(batch, 8)
    tm = min(_round_up(tile_m, 8), b8)
    if b8 // tm < 2 and b8 >= 16:          # v7x: give the 2nd TensorCore work
        tm = _round_up(b8 // 2, 8)
    b_pad = _round_up(batch, tm)
    return tm, b_pad


def actor_forward(params, user_ids, item_ids, *, tanh=False, tile_m=256):
    """Equivalent of Actor.forward(data, tanh): returns (state, action)."""
    user_tbl = params["user_embeds"]
    item_tbl = params["item_embeds"]
    w1, b1 = params["w1"], params["b1"]
    w2, b2 = params["w2"], params["b2"]
    w3, b3 = params["w3"], params["b3"]

    n_users, eu = user_tbl.shape
    n_items, ei = item_tbl.shape
    if item_tbl.dtype != user_tbl.dtype:
        item_tbl = item_tbl.astype(user_tbl.dtype)

    # VMEM-resident fast path only (tables in this module are tiny).
    # TODO(synk): large embedding tables need an HBM-resident DMA-gather path.
    itemsize = jnp.dtype(user_tbl.dtype).itemsize
    tbl_vmem_bytes = (n_users * _round_up(eu, 128)
                      + n_items * _round_up(ei, 128)) * itemsize
    if tbl_vmem_bytes > 8 * 1024 * 1024:
        raise NotImplementedError("embedding tables too large for the "
                                  "VMEM-resident fast path")

    batch, n_seq = item_ids.shape
    d = eu + n_seq * ei
    d_pad = _round_up(d, 128)
    h1_dim, h2_dim, a_dim = w1.shape[1], w2.shape[1], w3.shape[1]
    h1p, h2p, ap = _round_up(h1_dim, 128), _round_up(h2_dim, 128), _round_up(a_dim, 128)

    f32 = jnp.float32
    # Zero-padded (lane-dense) weights; zeros propagate as zeros through relu/tanh.
    w1p = jnp.zeros((d_pad, h1p), f32).at[:d, :h1_dim].set(w1.astype(f32))
    b1p = jnp.zeros((1, h1p), f32).at[:, :h1_dim].set(b1.astype(f32).reshape(1, -1))
    w2p = jnp.zeros((h1p, h2p), f32).at[:h1_dim, :h2_dim].set(w2.astype(f32))
    b2p = jnp.zeros((1, h2p), f32).at[:, :h2_dim].set(b2.astype(f32).reshape(1, -1))
    w3p = jnp.zeros((h2p, ap), f32).at[:h2_dim, :a_dim].set(w3.astype(f32))
    b3p = jnp.zeros((1, ap), f32).at[:, :a_dim].set(b3.astype(f32).reshape(1, -1))

    tm, b_pad = _choose_tile(batch, tile_m)
    # Padded batch rows use id 0 (valid rows); padded outputs are sliced off.
    uid = jnp.zeros((b_pad,), jnp.int32).at[:batch].set(user_ids.astype(jnp.int32))
    iid = (jnp.zeros((b_pad, n_seq), jnp.int32)
           .at[:batch].set(item_ids.astype(jnp.int32)).reshape(-1))

    kernel = functools.partial(_actor_fused_kernel, tm=tm, n_seq=n_seq,
                               eu=eu, ei=ei, d=d, d_pad=d_pad, apply_tanh=tanh)

    flops = 2 * b_pad * (d_pad * h1p + h1p * h2p + h2p * ap)
    bytes_accessed = (itemsize * (user_tbl.size + item_tbl.size)
                      + 4 * (w1p.size + w2p.size + w3p.size + h1p + h2p + ap)
                      + 4 * (b_pad + b_pad * n_seq)
                      + itemsize * b_pad * d_pad + 4 * b_pad * ap)
    cost = pl.CostEstimate(flops=flops,
                           transcendentals=(b_pad * ap if tanh else 0),
                           bytes_accessed=bytes_accessed)

    grid_spec = pltpu.PrefetchScalarGridSpec(
        num_scalar_prefetch=2,
        grid=(b_pad // tm,),
        in_specs=[
            pl.BlockSpec((n_users, eu), lambda i, *_: (0, 0)),     # user table resident
            pl.BlockSpec((n_items, ei), lambda i, *_: (0, 0)),     # item table resident
            pl.BlockSpec((d_pad, h1p), lambda i, *_: (0, 0)),      # weights resident
            pl.BlockSpec((1, h1p), lambda i, *_: (0, 0)),
            pl.BlockSpec((h1p, h2p), lambda i, *_: (0, 0)),
            pl.BlockSpec((1, h2p), lambda i, *_: (0, 0)),
            pl.BlockSpec((h2p, ap), lambda i, *_: (0, 0)),
            pl.BlockSpec((1, ap), lambda i, *_: (0, 0)),
        ],
        out_specs=(
            pl.BlockSpec((tm, d_pad), lambda i, *_: (i, 0)),       # state (lane-padded)
            pl.BlockSpec((tm, ap), lambda i, *_: (i, 0)),          # action (lane-padded)
        ),
        scratch_shapes=[
            pltpu.VMEM((tm, eu), user_tbl.dtype),                  # user staging
            pltpu.VMEM((n_seq * tm, ei), item_tbl.dtype),          # item staging
            pltpu.VMEM((tm, d_pad), jnp.float32),                  # row-major state tile
        ],
    )

    state_pad, action_pad = pl.pallas_call(
        kernel,
        out_shape=(jax.ShapeDtypeStruct((b_pad, d_pad), user_tbl.dtype),
                   jax.ShapeDtypeStruct((b_pad, ap), f32)),
        grid_spec=grid_spec,
        compiler_params=pltpu.CompilerParams(dimension_semantics=("parallel",)),
        cost_estimate=cost,
    )(uid, iid, user_tbl, item_tbl, w1p, b1p, w2p, b2p, w3p, b3p)

    return state_pad[:batch, :d], action_pad[:batch, :a_dim]


def _linear_init(key, fan_in, fan_out):
    """PyTorch nn.Linear default init: U(-1/sqrt(fan_in), 1/sqrt(fan_in))."""
    kw, kb = jax.random.split(key)
    bound = 1.0 / jnp.sqrt(fan_in)
    w = jax.random.uniform(kw, (fan_in, fan_out), jnp.float32, -bound, bound)
    b = jax.random.uniform(kb, (fan_out,), jnp.float32, -bound, bound)
    return w, b


def make_params(key, n_users, n_items, embed_user, embed_item, n_seq,
                hidden_size_1, hidden_size_2, action_dim):
    ku, ki, k1, k2, k3 = jax.random.split(key, 5)
    input_dim = embed_user + n_seq * embed_item
    w1, b1 = _linear_init(k1, input_dim, hidden_size_1)
    w2, b2 = _linear_init(k2, hidden_size_1, hidden_size_2)
    w3, b3 = _linear_init(k3, hidden_size_2, action_dim)
    return {
        "user_embeds": jax.random.normal(ku, (n_users, embed_user), jnp.float32),
        "item_embeds": jax.random.normal(ki, (n_items, embed_item), jnp.float32),
        "w1": w1, "b1": b1,
        "w2": w2, "b2": b2,
        "w3": w3, "b3": b3,
    }


def _reference_forward(params, user_ids, item_ids, *, tanh=False):
    """Pure-JAX reference mirroring the PyTorch module."""
    user_repr = params["user_embeds"][user_ids]
    item_repr = params["item_embeds"][item_ids].reshape(item_ids.shape[0], -1)
    state = jnp.concatenate([user_repr, item_repr], axis=1)
    h = jnp.maximum(state @ params["w1"] + params["b1"], 0.0)
    h = jnp.maximum(h @ params["w2"] + params["b2"], 0.0)
    act = h @ params["w3"] + params["b3"]
    if tanh:
        act = jnp.tanh(act)
    return state, act


if __name__ == "__main__":
    BATCH = 4
    N_USERS, N_ITEMS = 10, 20
    EMBED_USER = EMBED_ITEM = 16
    N_SEQ = 8                                  # items per user (data['item'] width)
    HIDDEN_1, HIDDEN_2 = 64, 32
    ACTION_DIM = 8

    key = jax.random.PRNGKey(0)
    kp, ku, ki = jax.random.split(key, 3)
    params = make_params(kp, N_USERS, N_ITEMS, EMBED_USER, EMBED_ITEM, N_SEQ,
                         HIDDEN_1, HIDDEN_2, ACTION_DIM)

    user_ids = jax.random.randint(ku, (BATCH,), 0, N_USERS, dtype=jnp.int32)
    item_ids = jax.random.randint(ki, (BATCH, N_SEQ), 0, N_ITEMS, dtype=jnp.int32)

    for use_tanh in (False, True):            # forward(..., tanh=False) + get_action default
        state, action = actor_forward(params, user_ids, item_ids, tanh=use_tanh)
        state = jax.block_until_ready(state)
        action = jax.block_until_ready(action)

        ref_state, ref_action = _reference_forward(params, user_ids, item_ids,
                                                   tanh=use_tanh)
        assert state.shape == (BATCH, EMBED_USER + N_SEQ * EMBED_ITEM)
        assert action.shape == (BATCH, ACTION_DIM)
        assert jnp.allclose(state, ref_state, atol=1e-5, rtol=1e-5), "state mismatch"
        assert jnp.allclose(action, ref_action, atol=2e-4, rtol=2e-4), "action mismatch"

    print("KERNEL_OK")
</pallas_src>

<mosaic_0001>
module attributes {stable_mosaic.version = 11 : i64} {
  func.func @_actor_fused_kernel(%arg0: i32, %arg1: memref<8xi32, #tpu.memory_space<smem>>, %arg2: memref<64xi32, #tpu.memory_space<smem>>, %arg3: memref<10x16xf32, #tpu.memory_space<vmem>>, %arg4: memref<20x16xf32, #tpu.memory_space<vmem>>, %arg5: memref<256x128xf32, #tpu.memory_space<vmem>>, %arg6: memref<1x128xf32, #tpu.memory_space<vmem>>, %arg7: memref<128x128xf32, #tpu.memory_space<vmem>>, %arg8: memref<1x128xf32, #tpu.memory_space<vmem>>, %arg9: memref<128x128xf32, #tpu.memory_space<vmem>>, %arg10: memref<1x128xf32, #tpu.memory_space<vmem>>, %arg11: memref<8x256xf32, #tpu.memory_space<vmem>>, %arg12: memref<8x128xf32, #tpu.memory_space<vmem>>, %arg13: memref<8x16xf32, #tpu.memory_space<vmem>>, %arg14: memref<64x16xf32, #tpu.memory_space<vmem>>, %arg15: memref<8x256xf32, #tpu.memory_space<vmem>>) attributes {dimension_semantics = [#tpu.dimension_semantics<parallel>], iteration_bounds = array<i64: 1>, scalar_prefetch = 2 : i64, scratch_operands = 3 : i64, tpu.core_type = #tpu.core_type<tc>, window_params = [{pipeline_mode = #tpu.pipeline_mode<synchronous>, transform_indices = @transform_0, window_bounds = array<i64: 10, 16>}, {pipeline_mode = #tpu.pipeline_mode<synchronous>, transform_indices = @transform_1, window_bounds = array<i64: 20, 16>}, {pipeline_mode = #tpu.pipeline_mode<synchronous>, transform_indices = @transform_2, window_bounds = array<i64: 256, 128>}, {pipeline_mode = #tpu.pipeline_mode<synchronous>, transform_indices = @transform_3, window_bounds = array<i64: 1, 128>}, {pipeline_mode = #tpu.pipeline_mode<synchronous>, transform_indices = @transform_4, window_bounds = array<i64: 128, 128>}, {pipeline_mode = #tpu.pipeline_mode<synchronous>, transform_indices = @transform_5, window_bounds = array<i64: 1, 128>}, {pipeline_mode = #tpu.pipeline_mode<synchronous>, transform_indices = @transform_6, window_bounds = array<i64: 128, 128>}, {pipeline_mode = #tpu.pipeline_mode<synchronous>, transform_indices = @transform_7, window_bounds = array<i64: 1, 128>}, {transform_indices = @transform_8, window_bounds = array<i64: 8, 256>}, {transform_indices = @transform_9, window_bounds = array<i64: 8, 128>}]} {
    %c8_i32 = arith.constant 8 : i32
    %0 = arith.muli %arg0, %c8_i32 : i32
    %c0_i32 = arith.constant 0 : i32
    %c8_i32_0 = arith.constant 8 : i32
    %1 = arith.addi %c0_i32, %c8_i32_0 : i32
    %c1_i32 = arith.constant 1 : i32
    scf.for %arg16 = %c0_i32 to %1 step %c1_i32  : i32 {
      %c1_i32_49 = arith.constant 1 : i32
      %44 = arith.muli %arg16, %c1_i32_49 : i32
      %c0_i32_50 = arith.constant 0 : i32
      %45 = arith.addi %c0_i32_50, %44 : i32
      %46 = arith.addi %0, %45 : i32
      %47 = arith.index_cast %46 : i32 to index
      %48 = memref.load %arg1[%47] : memref<8xi32, #tpu.memory_space<smem>>
      %49 = arith.index_cast %48 : i32 to index
      %c0_51 = arith.constant 0 : index
      %50 = vector.load %arg3[%49, %c0_51] : memref<10x16xf32, #tpu.memory_space<vmem>>, vector<1x16xf32>
      %51 = arith.index_cast %45 : i32 to index
      %c0_52 = arith.constant 0 : index
      %52 = vector.load %arg13[%51, %c0_52] : memref<8x16xf32, #tpu.memory_space<vmem>>, vector<1x16xf32>
      tpu.vector_store %arg13[%51, %c0_52], %50 {strides = array<i32>} : memref<8x16xf32, #tpu.memory_space<vmem>>, vector<1x16xf32>,
      %c8_i32_53 = arith.constant 8 : i32
      %53 = arith.muli %46, %c8_i32_53 : i32
      %c0_i32_54 = arith.constant 0 : i32
      %54 = arith.addi %53, %c0_i32_54 : i32
      %55 = arith.index_cast %54 : i32 to index
      %56 = memref.load %arg2[%55] : memref<64xi32, #tpu.memory_space<smem>>
      %57 = arith.index_cast %56 : i32 to index
      %c0_55 = arith.constant 0 : index
      %58 = vector.load %arg4[%57, %c0_55] : memref<20x16xf32, #tpu.memory_space<vmem>>, vector<1x16xf32>
      %c0_i32_56 = arith.constant 0 : i32
      %59 = arith.addi %c0_i32_56, %45 : i32
      %60 = arith.index_cast %59 : i32 to index
      %c0_57 = arith.constant 0 : index
      %61 = vector.load %arg14[%60, %c0_57] : memref<64x16xf32, #tpu.memory_space<vmem>>, vector<1x16xf32>
      tpu.vector_store %arg14[%60, %c0_57], %58 {strides = array<i32>} : memref<64x16xf32, #tpu.memory_space<vmem>>, vector<1x16xf32>,
      %c8_i32_58 = arith.constant 8 : i32
      %62 = arith.muli %46, %c8_i32_58 : i32
      %c1_i32_59 = arith.constant 1 : i32
      %63 = arith.addi %62, %c1_i32_59 : i32
      %64 = arith.index_cast %63 : i32 to index
      %65 = memref.load %arg2[%64] : memref<64xi32, #tpu.memory_space<smem>>
      %66 = arith.index_cast %65 : i32 to index
      %c0_60 = arith.constant 0 : index
      %67 = vector.load %arg4[%66, %c0_60] : memref<20x16xf32, #tpu.memory_space<vmem>>, vector<1x16xf32>
      %c8_i32_61 = arith.constant 8 : i32
      %68 = arith.addi %c8_i32_61, %45 : i32
      %69 = arith.index_cast %68 : i32 to index
      %c0_62 = arith.constant 0 : index
      %70 = vector.load %arg14[%69, %c0_62] : memref<64x16xf32, #tpu.memory_space<vmem>>, vector<1x16xf32>
      tpu.vector_store %arg14[%69, %c0_62], %67 {strides = array<i32>} : memref<64x16xf32, #tpu.memory_space<vmem>>, vector<1x16xf32>,
      %c8_i32_63 = arith.constant 8 : i32
      %71 = arith.muli %46, %c8_i32_63 : i32
      %c2_i32 = arith.constant 2 : i32
      %72 = arith.addi %71, %c2_i32 : i32
      %73 = arith.index_cast %72 : i32 to index
      %74 = memref.load %arg2[%73] : memref<64xi32, #tpu.memory_space<smem>>
      %75 = arith.index_cast %74 : i32 to index
      %c0_64 = arith.constant 0 : index
      %76 = vector.load %arg4[%75, %c0_64] : memref<20x16xf32, #tpu.memory_space<vmem>>, vector<1x16xf32>
      %c16_i32 = arith.constant 16 : i32
      %77 = arith.addi %c16_i32, %45 : i32
      %78 = arith.index_cast %77 : i32 to index
      %c0_65 = arith.constant 0 : index
      %79 = vector.load %arg14[%78, %c0_65] : memref<64x16xf32, #tpu.memory_space<vmem>>, vector<1x16xf32>
      tpu.vector_store %arg14[%78, %c0_65], %76 {strides = array<i32>} : memref<64x16xf32, #tpu.memory_space<vmem>>, vector<1x16xf32>,
      %c8_i32_66 = arith.constant 8 : i32
      %80 = arith.muli %46, %c8_i32_66 : i32
      %c3_i32 = arith.constant 3 : i32
      %81 = arith.addi %80, %c3_i32 : i32
      %82 = arith.index_cast %81 : i32 to index
      %83 = memref.load %arg2[%82] : memref<64xi32, #tpu.memory_space<smem>>
      %84 = arith.index_cast %83 : i32 to index
      %c0_67 = arith.constant 0 : index
      %85 = vector.load %arg4[%84, %c0_67] : memref<20x16xf32, #tpu.memory_space<vmem>>, vector<1x16xf32>
      %c24_i32 = arith.constant 24 : i32
      %86 = arith.addi %c24_i32, %45 : i32
      %87 = arith.index_cast %86 : i32 to index
      %c0_68 = arith.constant 0 : index
      %88 = vector.load %arg14[%87, %c0_68] : memref<64x16xf32, #tpu.memory_space<vmem>>, vector<1x16xf32>
      tpu.vector_store %arg14[%87, %c0_68], %85 {strides = array<i32>} : memref<64x16xf32, #tpu.memory_space<vmem>>, vector<1x16xf32>,
      %c8_i32_69 = arith.constant 8 : i32
      %89 = arith.muli %46, %c8_i32_69 : i32
      %c4_i32 = arith.constant 4 : i32
      %90 = arith.addi %89, %c4_i32 : i32
      %91 = arith.index_cast %90 : i32 to index
      %92 = memref.load %arg2[%91] : memref<64xi32, #tpu.memory_space<smem>>
      %93 = arith.index_cast %92 : i32 to index
      %c0_70 = arith.constant 0 : index
      %94 = vector.load %arg4[%93, %c0_70] : memref<20x16xf32, #tpu.memory_space<vmem>>, vector<1x16xf32>
      %c32_i32 = arith.constant 32 : i32
      %95 = arith.addi %c32_i32, %45 : i32
      %96 = arith.index_cast %95 : i32 to index
      %c0_71 = arith.constant 0 : index
      %97 = vector.load %arg14[%96, %c0_71] : memref<64x16xf32, #tpu.memory_space<vmem>>, vector<1x16xf32>
      tpu.vector_store %arg14[%96, %c0_71], %94 {strides = array<i32>} : memref<64x16xf32, #tpu.memory_space<vmem>>, vector<1x16xf32>,
      %c8_i32_72 = arith.constant 8 : i32
      %98 = arith.muli %46, %c8_i32_72 : i32
      %c5_i32 = arith.constant 5 : i32
      %99 = arith.addi %98, %c5_i32 : i32
      %100 = arith.index_cast %99 : i32 to index
      %101 = memref.load %arg2[%100] : memref<64xi32, #tpu.memory_space<smem>>
      %102 = arith.index_cast %101 : i32 to index
      %c0_73 = arith.constant 0 : index
      %103 = vector.load %arg4[%102, %c0_73] : memref<20x16xf32, #tpu.memory_space<vmem>>, vector<1x16xf32>
      %c40_i32 = arith.constant 40 : i32
      %104 = arith.addi %c40_i32, %45 : i32
      %105 = arith.index_cast %104 : i32 to index
      %c0_74 = arith.constant 0 : index
      %106 = vector.load %arg14[%105, %c0_74] : memref<64x16xf32, #tpu.memory_space<vmem>>, vector<1x16xf32>
      tpu.vector_store %arg14[%105, %c0_74], %103 {strides = array<i32>} : memref<64x16xf32, #tpu.memory_space<vmem>>, vector<1x16xf32>,
      %c8_i32_75 = arith.constant 8 : i32
      %107 = arith.muli %46, %c8_i32_75 : i32
      %c6_i32 = arith.constant 6 : i32
      %108 = arith.addi %107, %c6_i32 : i32
      %109 = arith.index_cast %108 : i32 to index
      %110 = memref.load %arg2[%109] : memref<64xi32, #tpu.memory_space<smem>>
      %111 = arith.index_cast %110 : i32 to index
      %c0_76 = arith.constant 0 : index
      %112 = vector.load %arg4[%111, %c0_76] : memref<20x16xf32, #tpu.memory_space<vmem>>, vector<1x16xf32>
      %c48_i32 = arith.constant 48 : i32
      %113 = arith.addi %c48_i32, %45 : i32
      %114 = arith.index_cast %113 : i32 to index
      %c0_77 = arith.constant 0 : index
      %115 = vector.load %arg14[%114, %c0_77] : memref<64x16xf32, #tpu.memory_space<vmem>>, vector<1x16xf32>
      tpu.vector_store %arg14[%114, %c0_77], %112 {strides = array<i32>} : memref<64x16xf32, #tpu.memory_space<vmem>>, vector<1x16xf32>,
      %c8_i32_78 = arith.constant 8 : i32
      %116 = arith.muli %46, %c8_i32_78 : i32
      %c7_i32 = arith.constant 7 : i32
      %117 = arith.addi %116, %c7_i32 : i32
      %118 = arith.index_cast %117 : i32 to index
      %119 = memref.load %arg2[%118] : memref<64xi32, #tpu.memory_space<smem>>
      %120 = arith.index_cast %119 : i32 to index
      %c0_79 = arith.constant 0 : index
      %121 = vector.load %arg4[%120, %c0_79] : memref<20x16xf32, #tpu.memory_space<vmem>>, vector<1x16xf32>
      %c56_i32 = arith.constant 56 : i32
      %122 = arith.addi %c56_i32, %45 : i32
      %123 = arith.index_cast %122 : i32 to index
      %c0_80 = arith.constant 0 : index
      %124 = vector.load %arg14[%123, %c0_80] : memref<64x16xf32, #tpu.memory_space<vmem>>, vector<1x16xf32>
      tpu.vector_store %arg14[%123, %c0_80], %121 {strides = array<i32>} : memref<64x16xf32, #tpu.memory_space<vmem>>, vector<1x16xf32>,
    }
    %c8_i32_1 = arith.constant 8 : i32
    %c0 = arith.constant 0 : index
    %c0_2 = arith.constant 0 : index
    %2 = vector.load %arg13[%c0, %c0_2] : memref<8x16xf32, #tpu.memory_space<vmem>>, vector<8x16xf32>
    %c0_3 = arith.constant 0 : index
    %c0_4 = arith.constant 0 : index
    %3 = vector.load %arg15[%c0_3, %c0_4] : memref<8x256xf32, #tpu.memory_space<vmem>>, vector<8x16xf32>
    tpu.vector_store %arg15[%c0_3, %c0_4], %2 {strides = array<i32>} : memref<8x256xf32, #tpu.memory_space<vmem>>, vector<8x16xf32>,
    %c0_5 = arith.constant 0 : index
    %c0_6 = arith.constant 0 : index
    %4 = vector.load %arg14[%c0_5, %c0_6] : memref<64x16xf32, #tpu.memory_space<vmem>>, vector<8x16xf32>
    %c0_7 = arith.constant 0 : index
    %c16 = arith.constant 16 : index
    %5 = vector.load %arg15[%c0_7, %c16] : memref<8x256xf32, #tpu.memory_space<vmem>>, vector<8x16xf32>
    tpu.vector_store %arg15[%c0_7, %c16], %4 {strides = array<i32>} : memref<8x256xf32, #tpu.memory_space<vmem>>, vector<8x16xf32>,
    %c8 = arith.constant 8 : index
    %c0_8 = arith.constant 0 : index
    %6 = vector.load %arg14[%c8, %c0_8] : memref<64x16xf32, #tpu.memory_space<vmem>>, vector<8x16xf32>
    %c0_9 = arith.constant 0 : index
    %c32 = arith.constant 32 : index
    %7 = vector.load %arg15[%c0_9, %c32] : memref<8x256xf32, #tpu.memory_space<vmem>>, vector<8x16xf32>
    tpu.vector_store %arg15[%c0_9, %c32], %6 {strides = array<i32>} : memref<8x256xf32, #tpu.memory_space<vmem>>, vector<8x16xf32>,
    %c16_10 = arith.constant 16 : index
    %c0_11 = arith.constant 0 : index
    %8 = vector.load %arg14[%c16_10, %c0_11] : memref<64x16xf32, #tpu.memory_space<vmem>>, vector<8x16xf32>
    %c0_12 = arith.constant 0 : index
    %c48 = arith.constant 48 : index
    %9 = vector.load %arg15[%c0_12, %c48] : memref<8x256xf32, #tpu.memory_space<vmem>>, vector<8x16xf32>
    tpu.vector_store %arg15[%c0_12, %c48], %8 {strides = array<i32>} : memref<8x256xf32, #tpu.memory_space<vmem>>, vector<8x16xf32>,
    %c24 = arith.constant 24 : index
    %c0_13 = arith.constant 0 : index
    %10 = vector.load %arg14[%c24, %c0_13] : memref<64x16xf32, #tpu.memory_space<vmem>>, vector<8x16xf32>
    %c0_14 = arith.constant 0 : index
    %c64 = arith.constant 64 : index
    %11 = vector.load %arg15[%c0_14, %c64] : memref<8x256xf32, #tpu.memory_space<vmem>>, vector<8x16xf32>
    tpu.vector_store %arg15[%c0_14, %c64], %10 {strides = array<i32>} : memref<8x256xf32, #tpu.memory_space<vmem>>, vector<8x16xf32>,
    %c32_15 = arith.constant 32 : index
    %c0_16 = arith.constant 0 : index
    %12 = vector.load %arg14[%c32_15, %c0_16] : memref<64x16xf32, #tpu.memory_space<vmem>>, vector<8x16xf32>
    %c0_17 = arith.constant 0 : index
    %c80 = arith.constant 80 : index
    %13 = vector.load %arg15[%c0_17, %c80] : memref<8x256xf32, #tpu.memory_space<vmem>>, vector<8x16xf32>
    tpu.vector_store %arg15[%c0_17, %c80], %12 {strides = array<i32>} : memref<8x256xf32, #tpu.memory_space<vmem>>, vector<8x16xf32>,
    %c40 = arith.constant 40 : index
    %c0_18 = arith.constant 0 : index
    %14 = vector.load %arg14[%c40, %c0_18] : memref<64x16xf32, #tpu.memory_space<vmem>>, vector<8x16xf32>
    %c0_19 = arith.constant 0 : index
    %c96 = arith.constant 96 : index
    %15 = vector.load %arg15[%c0_19, %c96] : memref<8x256xf32, #tpu.memory_space<vmem>>, vector<8x16xf32>
    tpu.vector_store %arg15[%c0_19, %c96], %14 {strides = array<i32>} : memref<8x256xf32, #tpu.memory_space<vmem>>, vector<8x16xf32>,
    %c48_20 = arith.constant 48 : index
    %c0_21 = arith.constant 0 : index
    %16 = vector.load %arg14[%c48_20, %c0_21] : memref<64x16xf32, #tpu.memory_space<vmem>>, vector<8x16xf32>
    %c0_22 = arith.constant 0 : index
    %c112 = arith.constant 112 : index
    %17 = vector.load %arg15[%c0_22, %c112] : memref<8x256xf32, #tpu.memory_space<vmem>>, vector<8x16xf32>
    tpu.vector_store %arg15[%c0_22, %c112], %16 {strides = array<i32>} : memref<8x256xf32, #tpu.memory_space<vmem>>, vector<8x16xf32>,
    %c56 = arith.constant 56 : index
    %c0_23 = arith.constant 0 : index
    %18 = vector.load %arg14[%c56, %c0_23] : memref<64x16xf32, #tpu.memory_space<vmem>>, vector<8x16xf32>
    %c0_24 = arith.constant 0 : index
    %c128 = arith.constant 128 : index
    %19 = vector.load %arg15[%c0_24, %c128] : memref<8x256xf32, #tpu.memory_space<vmem>>, vector<8x16xf32>
    tpu.vector_store %arg15[%c0_24, %c128], %18 {strides = array<i32>} : memref<8x256xf32, #tpu.memory_space<vmem>>, vector<8x16xf32>,
    %cst = arith.constant 0.000000e+00 : f32
    %20 = vector.broadcast %cst : f32 to vector<8x112xf32>
    %c0_25 = arith.constant 0 : index
    %c144 = arith.constant 144 : index
    %21 = vector.load %arg15[%c0_25, %c144] : memref<8x256xf32, #tpu.memory_space<vmem>>, vector<8x112xf32>
    tpu.vector_store %arg15[%c0_25, %c144], %20 {strides = array<i32>} : memref<8x256xf32, #tpu.memory_space<vmem>>, vector<8x112xf32>,
    %c0_26 = arith.constant 0 : index
    %c0_27 = arith.constant 0 : index
    %22 = vector.load %arg15[%c0_26, %c0_27] : memref<8x256xf32, #tpu.memory_space<vmem>>, vector<8x256xf32>
    %c0_28 = arith.constant 0 : index
    %c0_29 = arith.constant 0 : index
    %23 = vector.load %arg11[%c0_28, %c0_29] : memref<8x256xf32, #tpu.memory_space<vmem>>, vector<8x256xf32>
    tpu.vector_store %arg11[%c0_28, %c0_29], %22 {strides = array<i32>} : memref<8x256xf32, #tpu.memory_space<vmem>>, vector<8x256xf32>,
    %c0_30 = arith.constant 0 : index
    %c0_31 = arith.constant 0 : index
    %24 = vector.load %arg5[%c0_30, %c0_31] : memref<256x128xf32, #tpu.memory_space<vmem>>, vector<256x128xf32>
    %cst_32 = arith.constant dense<0.000000e+00> : vector<8x128xf32>
    %25 = tpu.matmul %22, %24, %cst_32 {dimension_numbers = #tpu.dot_dimension_numbers<[1], [0], [0], [1], [0, 0, 1, 1], [], []>} : vector<8x256xf32>, vector<256x128xf32>, vector<8x128xf32> -> vector<8x128xf32>
    %c0_33 = arith.constant 0 : index
    %c0_34 = arith.constant 0 : index
    %26 = vector.load %arg6[%c0_33, %c0_34] : memref<1x128xf32, #tpu.memory_space<vmem>>, vector<1x128xf32>
    %27 = vector.broadcast %26 : vector<1x128xf32> to vector<8x128xf32>
    %28 = arith.addf %25, %27 : vector<8x128xf32>
    %cst_35 = arith.constant 0.000000e+00 : f32
    %29 = vector.broadcast %cst_35 : f32 to vector<8x128xf32>
    %30 = arith.maximumf %28, %29 : vector<8x128xf32>
    %c0_36 = arith.constant 0 : index
    %c0_37 = arith.constant 0 : index
    %31 = vector.load %arg7[%c0_36, %c0_37] : memref<128x128xf32, #tpu.memory_space<vmem>>, vector<128x128xf32>
    %cst_38 = arith.constant dense<0.000000e+00> : vector<8x128xf32>
    %32 = tpu.matmul %30, %31, %cst_38 {dimension_numbers = #tpu.dot_dimension_numbers<[1], [0], [0], [1], [0, 0, 1, 1], [], []>} : vector<8x128xf32>, vector<128x128xf32>, vector<8x128xf32> -> vector<8x128xf32>
    %c0_39 = arith.constant 0 : index
    %c0_40 = arith.constant 0 : index
    %33 = vector.load %arg8[%c0_39, %c0_40] : memref<1x128xf32, #tpu.memory_space<vmem>>, vector<1x128xf32>
    %34 = vector.broadcast %33 : vector<1x128xf32> to vector<8x128xf32>
    %35 = arith.addf %32, %34 : vector<8x128xf32>
    %cst_41 = arith.constant 0.000000e+00 : f32
    %36 = vector.broadcast %cst_41 : f32 to vector<8x128xf32>
    %37 = arith.maximumf %35, %36 : vector<8x128xf32>
    %c0_42 = arith.constant 0 : index
    %c0_43 = arith.constant 0 : index
    %38 = vector.load %arg9[%c0_42, %c0_43] : memref<128x128xf32, #tpu.memory_space<vmem>>, vector<128x128xf32>
    %cst_44 = arith.constant dense<0.000000e+00> : vector<8x128xf32>
    %39 = tpu.matmul %37, %38, %cst_44 {dimension_numbers = #tpu.dot_dimension_numbers<[1], [0], [0], [1], [0, 0, 1, 1], [], []>} : vector<8x128xf32>, vector<128x128xf32>, vector<8x128xf32> -> vector<8x128xf32>
    %c0_45 = arith.constant 0 : index
    %c0_46 = arith.constant 0 : index
    %40 = vector.load %arg10[%c0_45, %c0_46] : memref<1x128xf32, #tpu.memory_space<vmem>>, vector<1x128xf32>
    %41 = vector.broadcast %40 : vector<1x128xf32> to vector<8x128xf32>
    %42 = arith.addf %39, %41 : vector<8x128xf32>
    %c0_47 = arith.constant 0 : index
    %c0_48 = arith.constant 0 : index
    %43 = vector.load %arg12[%c0_47, %c0_48] : memref<8x128xf32, #tpu.memory_space<vmem>>, vector<8x128xf32>
    tpu.vector_store %arg12[%c0_47, %c0_48], %42 {strides = array<i32>} : memref<8x128xf32, #tpu.memory_space<vmem>>, vector<8x128xf32>,
    return
  }
  func.func @transform_0(%arg0: i32, %arg1: memref<8xi32, #tpu.memory_space<smem>>, %arg2: memref<64xi32, #tpu.memory_space<smem>>) -> (i32, i32) {
    %c0_i32 = arith.constant 0 : i32
    %c0_i32_0 = arith.constant 0 : i32
    %c0_i32_1 = arith.constant 0 : i32
    return %c0_i32, %c0_i32_0 : i32, i32
  }
  func.func @transform_1(%arg0: i32, %arg1: memref<8xi32, #tpu.memory_space<smem>>, %arg2: memref<64xi32, #tpu.memory_space<smem>>) -> (i32, i32) {
    %c0_i32 = arith.constant 0 : i32
    %c0_i32_0 = arith.constant 0 : i32
    %c0_i32_1 = arith.constant 0 : i32
    return %c0_i32, %c0_i32_0 : i32, i32
  }
  func.func @transform_2(%arg0: i32, %arg1: memref<8xi32, #tpu.memory_space<smem>>, %arg2: memref<64xi32, #tpu.memory_space<smem>>) -> (i32, i32) {
    %c0_i32 = arith.constant 0 : i32
    %c0_i32_0 = arith.constant 0 : i32
    %c0_i32_1 = arith.constant 0 : i32
    return %c0_i32, %c0_i32_0 : i32, i32
  }
  func.func @transform_3(%arg0: i32, %arg1: memref<8xi32, #tpu.memory_space<smem>>, %arg2: memref<64xi32, #tpu.memory_space<smem>>) -> (i32, i32) {
    %c0_i32 = arith.constant 0 : i32
    %c0_i32_0 = arith.constant 0 : i32
    %c0_i32_1 = arith.constant 0 : i32
    return %c0_i32, %c0_i32_0 : i32, i32
  }
  func.func @transform_4(%arg0: i32, %arg1: memref<8xi32, #tpu.memory_space<smem>>, %arg2: memref<64xi32, #tpu.memory_space<smem>>) -> (i32, i32) {
    %c0_i32 = arith.constant 0 : i32
    %c0_i32_0 = arith.constant 0 : i32
    %c0_i32_1 = arith.constant 0 : i32
    return %c0_i32, %c0_i32_0 : i32, i32
  }
  func.func @transform_5(%arg0: i32, %arg1: memref<8xi32, #tpu.memory_space<smem>>, %arg2: memref<64xi32, #tpu.memory_space<smem>>) -> (i32, i32) {
    %c0_i32 = arith.constant 0 : i32
    %c0_i32_0 = arith.constant 0 : i32
    %c0_i32_1 = arith.constant 0 : i32
    return %c0_i32, %c0_i32_0 : i32, i32
  }
  func.func @transform_6(%arg0: i32, %arg1: memref<8xi32, #tpu.memory_space<smem>>, %arg2: memref<64xi32, #tpu.memory_space<smem>>) -> (i32, i32) {
    %c0_i32 = arith.constant 0 : i32
    %c0_i32_0 = arith.constant 0 : i32
    %c0_i32_1 = arith.constant 0 : i32
    return %c0_i32, %c0_i32_0 : i32, i32
  }
  func.func @transform_7(%arg0: i32, %arg1: memref<8xi32, #tpu.memory_space<smem>>, %arg2: memref<64xi32, #tpu.memory_space<smem>>) -> (i32, i32) {
    %c0_i32 = arith.constant 0 : i32
    %c0_i32_0 = arith.constant 0 : i32
    %c0_i32_1 = arith.constant 0 : i32
    return %c0_i32, %c0_i32_0 : i32, i32
  }
  func.func @transform_8(%arg0: i32, %arg1: memref<8xi32, #tpu.memory_space<smem>>, %arg2: memref<64xi32, #tpu.memory_space<smem>>) -> (i32, i32) {
    %c0_i32 = arith.constant 0 : i32
    %c0_i32_0 = arith.constant 0 : i32
    return %arg0, %c0_i32 : i32, i32
  }
  func.func @transform_9(%arg0: i32, %arg1: memref<8xi32, #tpu.memory_space<smem>>, %arg2: memref<64xi32, #tpu.memory_space<smem>>) -> (i32, i32) {
    %c0_i32 = arith.constant 0 : i32
    %c0_i32_0 = arith.constant 0 : i32
    return %arg0, %c0_i32 : i32, i32
  }
}

</mosaic_0001>

<bundles_post_ra>
// kernel: tpu_custom_call.1
= control target key start
LH: loop header
LB: loop body
LE: loop exit
PB: predicated region body
PF: predicated region fallthrough
CT: control target
= control target key end

     0   :  { %s1231_s0 = inlined_call_operand.vmem [shape: s32[8], index: 0, kind: input, shape index: {}]   ;;  %s1232_s2 = inlined_call_operand.vmem [shape: f32[10,16], index: 2, kind: input, shape index: {}]   ;;  %s1233_s3 = inlined_call_operand.vmem [shape: f32[20,16], index: 3, kind: input, shape index: {}]   ;;  %s1234_s4 = inlined_call_operand.hbm [shape: f32[256,128], index: 4, kind: input, shape index: {}]   ;;  %s1235_s5 = inlined_call_operand.vmem [shape: f32[1,128], index: 5, kind: input, shape index: {}]   ;;  %s1236_s6 = inlined_call_operand.hbm [shape: f32[128,128], index: 6, kind: input, shape index: {}]   ;;  %s1237_s7 = inlined_call_operand.vmem [shape: f32[1,128], index: 7, kind: input, shape index: {}]   ;;  %s1238_s8 = inlined_call_operand.hbm [shape: f32[128,128], index: 8, kind: input, shape index: {}]   ;;  %s1239_s9 = inlined_call_operand.vmem [shape: f32[1,128], index: 9, kind: input, shape index: {}]   ;;  %s1240_s10 = inlined_call_operand.hbm [shape: f32[8,256], index: 10, kind: output, shape index: {0}]   ;;  %s1241_s11 = inlined_call_operand.hbm [shape: f32[8,128], index: 11, kind: output, shape index: {1}]   ;;  %s1242_s1 = inlined_call_operand.vmem [shape: s32[64], index: 1, kind: input, shape index: {}]  }
   0x1   :  { %s17_s19 = sshll.u32 %s1231_s0, 4  ;;  %s21_s22 = sshll.u32 %s1242_s1, 4  ;;  %s18_s19 = int_to_ptr.vmem [resolvable:$true] %s17_s19  ;;  %s22_s22 = int_to_ptr.vmem [resolvable:$true] %s21_s22 }
   0x2   :  { %s830_s23 = scalar_lea.vmem %s18_s19, 16  ;;  %p835_p1 = scmp.lt.s32.totalorder %s18_s19, %s18_s19 }
   0x3   :  { %p831_p0 = scmp.ne.s32.totalorder %s18_s19, %s830_s23  ;;  %p836_p2 = scmp.lt.s32.totalorder %s830_s23, %s830_s23 }
   0x5   :  { %p837_p3 = por %p836_p2, %p835_p1 }
   0x7   :  { %p838_p4 = pnand %p837_p3, %p831_p0 }
   0x9   :  { %841 = shalt.err (!%p838_p4)  }
   0xa   :  { %s982_s24 = smov [#allocation6]   ;;  %s842_s25 = scalar_lea.vmem %s22_s22, 16 }
   0xb   :  { %20 = dma.vmem_to_smem %s18_s19, 16, %s982_s24, [#allocation5] }
   0xc   :  { %p843_p5 = scmp.ne.s32.totalorder %s22_s22, %s842_s25  ;;  %p847_p6 = scmp.lt.s32.totalorder %s22_s22, %s22_s22 }
   0xd   :  { %p848_p7 = scmp.lt.s32.totalorder %s842_s25, %s842_s25 }
   0xf   :  { %p849_p8 = por %p848_p7, %p847_p6 }
  0x11   :  { %p850_p9 = pnand %p849_p8, %p843_p5 }
  0x13   :  { %853 = shalt.err (!%p850_p9)  }
  0x14   :  { %s983_s0 = smov [#allocation7]  }
  0x15   :  { %24 = dma.vmem_to_smem %s22_s22, 16, %s983_s0, [#allocation5] }
  0x16   :  { %968 = dma.done.wait [#allocation5], 32 }
  0x17   :  { %969 = vsyncadd [#allocation5], 4294967264 }
  0x18   :  { %26 = sfence }
  0x19   :  { %27 = vsyncpa [#allocation9], 0 }
  0x1a   :  { %28 = vsyncpa [#allocation12], 0 }
  0x1b   :  { %29 = vsyncpa [#allocation10], 0 }
  0x1c   :  { %30 = vsyncpa [#allocation16], 0  ;;  %s984_s1 = smov [#allocation11]   ;;  %s985_s27 = smov [#allocation8]  }
  0x1d   :  { %s54_s26 = sshll.u32 %s984_s1, 4  ;;  %s40_s28 = sshll.u32 %s985_s27, 4  ;;  %s55_s26 = int_to_ptr.vmem [resolvable:$true] %s54_s26  ;;  %s1067_s28 = int_to_ptr.vmem [resolvable:$true] %s40_s28 }
  0x1e   :  { %s854_s12 = scalar_lea.hbm %s1236_s6, 2048 }
  0x1f   :  { %p855_p10 = scmp.ne.s32.totalorder %s1236_s6, %s854_s12  ;;  %p858_p11 = scmp.lt.u32.totalorder %s854_s12, %s1236_s6 }
  0x21   :  { %p860_p12 = pnand %p858_p11, %p855_p10 }
  0x23   :  { %863 = shalt.err (!%p860_p12)
}
  0x24   :  { %s864_s17 = scalar_lea.vmem %s55_s26, 2048  ;;  %p869_p0 = scmp.lt.s32.totalorder %s55_s26, %s55_s26 }
  0x25   :  { %p865_p13 = scmp.ne.s32.totalorder %s55_s26, %s864_s17  ;;  %p870_p1 = scmp.lt.s32.totalorder %s864_s17, %s864_s17 }
  0x27   :  { %p871_p2 = por %p870_p1, %p869_p0 }
  0x29   :  { %p872_p3 = pnand %p871_p2, %p865_p13 }
  0x2b   :  { %875 = shalt.err (!%p872_p3)
}
  0x2c   :  { %s986_s18 = smov 128   ;;  %s987_s19 = smov 8  }
  0x2d   :  { %60 = dma.hbm_to_vmem [thread:$0]  %s1236_s6, 2048, %s55_s26, [#allocation12], %s986_s18, %s986_s18, %s987_s19  }
  0x2e   :  { %s876_s24 = scalar_lea.hbm %s1234_s4, 4096 }
  0x2f   :  { %p877_p4 = scmp.ne.s32.totalorder %s1234_s4, %s876_s24  ;;  %p880_p5 = scmp.lt.u32.totalorder %s876_s24, %s1234_s4 }
  0x31   :  { %p882_p6 = pnand %p880_p5, %p877_p4 }
  0x33   :  { %885 = shalt.err (!%p882_p6)
}
  0x34   :  { %s886_s29 = scalar_lea.vmem %s1067_s28, 4096  ;;  %p891_p8 = scmp.lt.s32.totalorder %s1067_s28, %s1067_s28 }
  0x35   :  { %p887_p7 = scmp.ne.s32.totalorder %s1067_s28, %s886_s29  ;;  %p892_p9 = scmp.lt.s32.totalorder %s886_s29, %s886_s29 }
  0x37   :  { %p893_p10 = por %p892_p9, %p891_p8 }
  0x39   :  { %p894_p11 = pnand %p893_p10, %p887_p7 }
  0x3b   :  { %897 = shalt.err (!%p894_p11)
}
  0x3c   :  { %46 = dma.hbm_to_vmem [thread:$0]  %s1234_s4, 4096, %s1067_s28, [#allocation9], %s986_s18, %s986_s18, %s987_s19  }
  0x3d   :  { %s988_s30 = smov [#allocation13]   ;;  %s898_s15 = scalar_lea.hbm %s1238_s8, 2048 }
  0x3e   :  { %s68_s12 = sshll.u32 %s988_s30, 4  ;;  %p899_p12 = scmp.ne.s32.totalorder %s1238_s8, %s898_s15  ;;  %s69_s12 = int_to_ptr.vmem [resolvable:$true] %s68_s12 }
  0x3f   :  { %p902_p13 = scmp.lt.u32.totalorder %s898_s15, %s1238_s8 }
  0x41   :  { %p904_p0 = pnand %p902_p13, %p899_p12 }
  0x43   :  { %907 = shalt.err (!%p904_p0)
}
  0x44   :  { %s908_s22 = scalar_lea.vmem %s69_s12, 2048  ;;  %p913_p2 = scmp.lt.s32.totalorder %s69_s12, %s69_s12 }
  0x45   :  { %p909_p1 = scmp.ne.s32.totalorder %s69_s12, %s908_s22  ;;  %p914_p3 = scmp.lt.s32.totalorder %s908_s22, %s908_s22 }
  0x47   :  { %p915_p4 = por %p914_p3, %p913_p2 }
  0x49   :  { %p916_p5 = pnand %p915_p4, %p909_p1 }
  0x4b   :  { %919 = shalt.err (!%p916_p5)
}
  0x4c   :  { %74 = dma.hbm_to_vmem [thread:$0]  %s1238_s8, 2048, %s69_s12, [#allocation12], %s986_s18, %s986_s18, %s987_s19  }
  0x4d   :  { %970 = dma.done.wait [#allocation9], 4096  }
  0x4e   :  { %971 = vsyncadd [#allocation9], 4294963200 }
  0x4f   :  { %972 = dma.done.wait [#allocation12], 4096  }
  0x50   :  { %973 = vsyncadd [#allocation12], 4294963200  ;;  %s1119_s23 = smov 0  }
  0x51 LB: > { %s94_s24 = sld [smem:[#allocation6 + %s980_s23]]  ;;  %s1126_s25 = sshll.u32 %s980_s23, 3  ;;  %vm98_vm0 = vcmask 122880   ;;  %s980_s23 = sphi %s1119_s23, %s92_s23  }
  0x52   : > { %s101_s8 = sld [smem:[#allocation7 + %s1126_s25]]  ;;  %s106_s18 = sadd.s32 1, %s1126_s25 }
  0x53   : > { %s107_s19 = sld [smem:[#allocation7 + %s106_s18]]  ;;  %s113_s0 = sadd.s32 2, %s1126_s25 }
  0x54   : > { %s114_s1 = sld [smem:[#allocation7 + %s113_s0]]  ;;  %s120_s27 = sadd.s32 3, %s1126_s25 }
  0x55   : > { %s121_s29 = sld [smem:[#allocation7 + %s120_s27]]  ;;  %s127_s6 = sadd.s32 4, %s1126_s25 }
  0x56   : > { %s128_s13 = sld [smem:[#allocation7 + %s127_s6]]  ;;  %s134_s14 = sadd.s32 5, %s1126_s25 }
  0x57   : > { %s95_s12 = scalar_lea.vmem %s1232_s2, %s94_s24  ;;  %s141_s15 = sadd.s32 6, %s1126_s25 }
  0x58   : > { %v96_v0 = vld [vmem:[%s95_s12] sm:$0x1]  ;;  %s97_s16 = scalar_lea.vmem [#allocation2], %s980_s23  ;;  %s102_s21 = scalar_lea.vmem %s1233_s3, %s101_s8 }
  0x59   : > { %99 = vst.msk [vmem:[%s97_s16] sm:$0x1] %vm98_vm0, %v96_v0  ;;  %s135_s22 = sld [smem:[#allocation7 + %s134_s14]]  ;;  %v103_v1 = vld [vmem:[%s102_s21] sm:$0x1]  ;;  %s108_s18 = scalar_lea.vmem %s1233_s3, %s107_s19 }
  0x5a   : > { %s142_s0 = sld [smem:[#allocation7 + %s141_s15]]  ;;  %s104_s24 = scalar_lea.vmem [#allocation3], %s980_s23  ;;  %v109_v2 = vld [vmem:[%s108_s18] sm:$0x1] }
  0x5b   : > { %105 = vst.msk [vmem:[%s104_s24] sm:$0x1] %vm98_vm0, %v103_v1  ;;  %s115_s26 = scalar_lea.vmem %s1233_s3, %s114_s1  ;;  %s148_s30 = sadd.s32 7, %s1126_s25  ;;  %574 = vst.msk [vmem:[%s104_s24 + $0x8] sm:$0x1] %vm98_vm0, %v109_v2 }
  0x5c   : > { %v116_v3 = vld [vmem:[%s115_s26] sm:$0x1]  ;;  %s122_s14 = scalar_lea.vmem %s1233_s3, %s121_s29  ;;  %s149_s16 = sld [smem:[#allocation7 + %s148_s30]] }
  0x5d   : > { %575 = vst.msk [vmem:[%s104_s24 + $0x10] sm:$0x1] %vm98_vm0, %v116_v3  ;;  %v123_v4 = vld [vmem:[%s122_s14] sm:$0x1]  ;;  %s129_s17 = scalar_lea.vmem %s1233_s3, %s128_s13  ;;  %s92_s23 = sadd.s32 1, %s980_s23  }
  0x5e   : > { %576 = vst.msk [vmem:[%s104_s24 + $0x18] sm:$0x1] %vm98_vm0, %v123_v4  ;;  %v130_v5 = vld [vmem:[%s129_s17] sm:$0x1]  ;;  %p89_p6 = scmp.ge.s32.totalorder %s92_s23, 8  }
  0x5f   : > { %577 = vst.msk [vmem:[%s104_s24 + $0x20] sm:$0x1] %vm98_vm0, %v130_v5  ;;  %s136_s20 = scalar_lea.vmem %s1233_s3, %s135_s22  ;;  %s989_s22 = smov (%p89_p6), 16   ;;  %v231_v13 = vld [vmem:[#allocation8 + $0x80] sm:$0xff] (%p89_p6)  ;;  %v232_v14 = vld [vmem:[#allocation8 + $0x88] sm:$0xff] (%p89_p6)  ;;  %v233_v18 = vld [vmem:[#allocation8 + $0x90] sm:$0xff] (%p89_p6) }
  0x60   : > { %v137_v6 = vld [vmem:[%s136_s20] sm:$0x1]  ;;  %s143_s4 = scalar_lea.vmem %s1233_s3, %s142_s0  ;;  %91 = sbr.rel (!%p89_p6) target bundleno = 81 (0x51), region = 97  ;;  %v723_v15 = vpack.c.bf16 (%p89_p6), %v232_v14, %v231_v13  ;;  %v215_v16 = vld [vmem:[#allocation8] sm:$0xff] (%p89_p6)  ;;  %v234_v20 = vld [vmem:[#allocation8 + $0x98] sm:$0xff] (%p89_p6)  ;;  %vm156_vm1 = vcmask (%p89_p6), 130048  }
  0x61   : > { %578 = vst.msk [vmem:[%s104_s24 + $0x28] sm:$0x1] %vm98_vm0, %v137_v6  ;;  %v144_v7 = vld [vmem:[%s143_s4] sm:$0x1]  ;;  %s990_s0 = smov (%p89_p6), 48   ;;  %v217_v21 = vld [vmem:[#allocation8 + $0x10] sm:$0xff] (%p89_p6)  ;;  %v727_v24 = vpack.c.bf16 (%p89_p6), %v234_v20, %v233_v18 }
  0x62   : > { %579 = vst.msk [vmem:[%s104_s24 + $0x30] sm:$0x1] %vm98_vm0, %v144_v7  ;;  %s150_s18 = scalar_lea.vmem %s1233_s3, %s149_s16  ;;  %v216_v17 = vld [vmem:[#allocation8 + $0x8] sm:$0xff] (%p89_p6)  ;;  %v218_v22 = vld [vmem:[#allocation8 + $0x18] sm:$0xff] (%p89_p6)  ;;  %s991_s23 = smov (%p89_p6), 32   ;;  %v235_v25 = vld [vmem:[#allocation8 + $0xa0] sm:$0xff] (%p89_p6)  ;;  %724 = vmatprep.subr.bf16.mxu0 (%p89_p6), %v723_v15 }
  0x63   : > { %v151_v8 = vld [vmem:[%s150_s18] sm:$0x1]  ;;  %v725_v19 = vpack.c.bf16 (%p89_p6), %v216_v17, %v215_v16  ;;  %s992_s2 = smov (%p89_p6), 64   ;;  %vm209_vm2 = vcmask (%p89_p6), 1047680   ;;  %v729_v30 = vpack.c.bf16 (%p89_p6), %v218_v22, %v217_v21  ;;  %v219_v32 = vld [vmem:[#allocation8 + $0x20] sm:$0xff] (%p89_p6)  ;;  %v993_v34 = vmov (%p89_p6), 0.0  }
  0x64   : > { %580 = vst.msk [vmem:[%s104_s24 + $0x38] sm:$0x1] %vm98_vm0, %v151_v8  ;;  %v236_v26 = vld [vmem:[#allocation8 + $0xa8] sm:$0xff] (%p89_p6)  ;;  %s994_s3 = smov (%p89_p6), 80   ;;  %s995_s24 = smov (%p89_p6), 96   ;;  %v237_v35 = vld [vmem:[#allocation8 + $0xb0] sm:$0xff] (%p89_p6) }
  0x65   :  { %v155_v29 = vld [vmem:[#allocation2] sm:$0xff] (%p89_p6)  ;;  %726 = vmatpush3.bf16.msra.mxu0 (%p89_p6), %v725_v19  ;;  %v731_v31 = vpack.c.bf16 (%p89_p6), %v236_v26, %v235_v25  ;;  %v238_v36 = vld [vmem:[#allocation8 + $0xb8] sm:$0xff] (%p89_p6)  ;;  %v996_v38 = vmov (%p89_p6), 0.0|0.0   ;;  %v221_v41 = vld [vmem:[#allocation8 + $0x30] sm:$0xff] (%p89_p6)  ;;  %s997_s27 = smov (%p89_p6), 112   ;;  %vm163_vm3 = vcmask (%p89_p6), 261248  }
  0x66   :  { %157 = vst.msk [vmem:[#allocation4] sm:$0xff] (%p89_p6), %vm156_vm1, %v155_v29  ;;  %728 = vmatprep.subr.bf16.mxu0 (%p89_p6), %v727_v24  ;;  %v220_v33 = vld [vmem:[#allocation8 + $0x28] sm:$0xff] (%p89_p6)  ;;  %755 = vmatprep.subr.bf16.mxu1 (%p89_p6), %v996_v38  ;;  %v735_v40 = vpack.c.bf16 (%p89_p6), %v238_v36, %v237_v35  ;;  %v222_v42 = vld [vmem:[#allocation8 + $0x38] sm:$0xff] (%p89_p6)  ;;  %v239_v43 = vld [vmem:[#allocation8 + $0xc0] sm:$0xff] (%p89_p6)  ;;  %vm170_vm4 = vcmask (%p89_p6), 392448   ;;  %vm177_vm5 = vcmask (%p89_p6), 523648  }
  0x67   :  { %v733_v39 = vpack.c.bf16 %v220_v33, %v219_v32  ;;  %v240_v44 = vld [vmem:[#allocation8 + $0xc8] sm:$0xff]  ;;  %v325_v45 = vld [vmem:[#allocation11] sm:$0xff]  ;;  %v327_v47 = vld [vmem:[#allocation11 + $0x10] sm:$0xff]  ;;  %v737_v49 = vpack.c.bf16 %v222_v42, %v221_v41  ;;  %vm184_vm6 = vcmask 654848   ;;  %vm191_vm7 = vcmask 786048   ;;  %s999_s12 = smov [#allocation14]  }
  0x68   :  { %v326_v46 = vld [vmem:[#allocation11 + $0x8] sm:$0xff]  ;;  %v328_v48 = vld [vmem:[#allocation11 + $0x18] sm:$0xff]  ;;  %v739_v52 = vpack.c.bf16 %v240_v44, %v239_v43  ;;  %v223_v53 = vld [vmem:[#allocation8 + $0x40] sm:$0xff]  ;;  %vm198_vm8 = vcmask 917248   ;;  %vm205_vm9 = vcmask 1048448   ;;  %vm998_vm10 = vmmov 0  }
  0x69   :  { %730 = vmatpush3.bf16.msra.mxu0 %v729_v30  ;;  %v756_v51 = vpack.c.bf16 %v326_v46, %v325_v45  ;;  %v224_v54 = vld [vmem:[#allocation8 + $0x48] sm:$0xff]  ;;  %v241_v55 = vld [vmem:[#allocation8 + $0xd0] sm:$0xff]  ;;  %v242_v56 = vld [vmem:[#allocation8 + $0xd8] sm:$0xff]  ;;  %v759_v57 = vpack.c.bf16 %v328_v48, %v327_v47  ;;  %685 = vmatprep.mubr.msk.f32.mxu1 %vm998_vm10, %v993_v34 }
  0x6a   :  { %732 = vmatprep.subr.bf16.mxu0 %v731_v31  ;;  %v329_v58 = vld [vmem:[#allocation11 + $0x20] sm:$0xff]  ;;  %v330_v59 = vld [vmem:[#allocation11 + $0x28] sm:$0xff]  ;;  %v741_v60 = vpack.c.bf16 %v224_v54, %v223_v53  ;;  %v743_v61 = vpack.c.bf16 %v242_v56, %v241_v55  ;;  %v225_v62 = vld [vmem:[#allocation8 + $0x50] sm:$0xff] }
  0x6b   :  { %v158_v9 = vld [vmem:[#allocation3] sm:$0xff]  ;;  %v172_v10 = vld [vmem:[#allocation3 + $0x10] sm:$0xff]  ;;  %v165_v11 = vld [vmem:[#allocation3 + $0x8] sm:$0xff]  ;;  %757 = vmatpush3.bf16.msra.mxu1 %v756_v51  ;;  %v762_v2 = vpack.c.bf16 %v330_v59, %v329_v58 }
  0x6c   :  { %160 = vrot.lane.b32.xlu0 %v158_v9, %s989_s22  ;;  %174 = vrot.lane.b32.xlu1 %v172_v10, %s990_s0  ;;  %v179_v12 = vld [vmem:[#allocation3 + $0x18] sm:$0xff]  ;;  %v186_v23 = vld [vmem:[#allocation3 + $0x20] sm:$0xff]  ;;  %v193_v27 = vld [vmem:[#allocation3 + $0x28] sm:$0xff] }
  0x6d   :  { %v207_v28 = vld [vmem:[#allocation3 + $0x38] sm:$0xff]  ;;  %v200_v37 = vld [vmem:[#allocation3 + $0x30] sm:$0xff]  ;;  %734 = vmatpush3.bf16.msra.mxu0 %v733_v39  ;;  %758 = vmatprep.subr.bf16.mxu1 %v996_v38  ;;  %v226_v63 = vld [vmem:[#allocation8 + $0x58] sm:$0xff] }
  0x6e   :  { %208 = vst.msk [vmem:[#allocation4 + $0x8] sm:$0xff] %vm156_vm1, %v207_v28  ;;  %736 = vmatprep.subr.bf16.mxu0 %v735_v40  ;;  %v243_v0 = vld [vmem:[#allocation8 + $0xe0] sm:$0xff]  ;;  %v244_v1 = vld [vmem:[#allocation8 + $0xe8] sm:$0xff]  ;;  %v331_v3 = vld [vmem:[#allocation11 + $0x30] sm:$0xff]  ;;  %v745_v5 = vpack.c.bf16 %v226_v63, %v225_v62 }
  0x6f   :  { %210 = vst.msk [vmem:[#allocation4 + $0x8] sm:$0xff] %vm209_vm2, %v993_v34  ;;  %760 = vmatpush3.bf16.msra.mxu1 %v759_v57  ;;  %v332_v4 = vld [vmem:[#allocation11 + $0x38] sm:$0xff]  ;;  %v747_v6 = vpack.c.bf16 %v244_v1, %v243_v0  ;;  %v227_v7 = vld [vmem:[#allocation8 + $0x60] sm:$0xff]  ;;  %v228_v8 = vld [vmem:[#allocation8 + $0x68] sm:$0xff] }
  0x70   :  { %167 = vrot.lane.b32.xlu0 %v165_v11, %s991_s23  ;;  %181 = vrot.lane.b32.xlu1 %v179_v12, %s992_s2  ;;  %v245_v9 = vld [vmem:[#allocation8 + $0xf0] sm:$0xff]  ;;  %v246_v10 = vld [vmem:[#allocation8 + $0xf8] sm:$0xff]  ;;  %v765_v11 = vpack.c.bf16 %v332_v4, %v331_v3  ;;  %v333_v12 = vld [vmem:[#allocation11 + $0x40] sm:$0xff]  ;;  %v749_v14 = vpack.c.bf16 %v228_v8, %v227_v7 }
  0x71   :  { %738 = vmatpush3.bf16.msra.mxu0 %v737_v49  ;;  %761 = vmatprep.subr.bf16.mxu1 %v996_v38  ;;  %v334_v13 = vld [vmem:[#allocation11 + $0x48] sm:$0xff]  ;;  %v751_v15 = vpack.c.bf16 %v246_v10, %v245_v9  ;;  %v229_v16 = vld [vmem:[#allocation8 + $0x70] sm:$0xff]  ;;  %v230_v17 = vld [vmem:[#allocation8 + $0x78] sm:$0xff] }
  0x72   :  { %740 = vmatprep.subr.bf16.mxu0 %v739_v52  ;;  %v768_v18 = vpack.c.bf16 %v334_v13, %v333_v12  ;;  %v335_v19 = vld [vmem:[#allocation11 + $0x50] sm:$0xff]  ;;  %v336_v20 = vld [vmem:[#allocation11 + $0x58] sm:$0xff]  ;;  %v753_v21 = vpack.c.bf16 %v230_v17, %v229_v16  ;;  %v337_v31 = vld [vmem:[#allocation11 + $0x60] sm:$0xff] }
  0x73   :  { %763 = vmatpush3.bf16.msra.mxu1 %v762_v2  ;;  %v771_v22 = vpack.c.bf16 %v336_v20, %v335_v19  ;;  %v338_v32 = vld [vmem:[#allocation11 + $0x68] sm:$0xff]  ;;  %v339_v35 = vld [vmem:[#allocation11 + $0x70] sm:$0xff]  ;;  %v340_v36 = vld [vmem:[#allocation11 + $0x78] sm:$0xff] }
  0x74   :  { %188 = vrot.lane.b32.xlu0 %v186_v23, %s994_s3  ;;  %195 = vrot.lane.b32.xlu1 %v193_v27, %s995_s24  ;;  %v774_v33 = vpack.c.bf16 %v338_v32, %v337_v31  ;;  %v419_v39 = vld [vmem:[#allocation13] sm:$0xff]  ;;  %v420_v40 = vld [vmem:[#allocation13 + $0x8] sm:$0xff]  ;;  %v421_v41 = vld [vmem:[#allocation13 + $0x10] sm:$0xff] }
  0x75   :  { %742 = vmatpush3.bf16.msra.mxu0 %v741_v60  ;;  %764 = vmatprep.subr.bf16.mxu1 %v996_v38  ;;  %v780_v42 = vpack.c.bf16 %v420_v40, %v419_v39  ;;  %v422_v43 = vld [vmem:[#allocation13 + $0x18] sm:$0xff]  ;;  %v423_v45 = vld [vmem:[#allocation13 + $0x20] sm:$0xff]  ;;  %v424_v46 = vld [vmem:[#allocation13 + $0x28] sm:$0xff] }
  0x76   :  { %v212_v50 = vld [vmem:[#allocation4 + $0x8] sm:$0xff]  ;;  %744 = vmatprep.subr.bf16.mxu0 %v743_v61  ;;  %v783_v44 = vpack.c.bf16 %v422_v43, %v421_v41  ;;  %v786_v47 = vpack.c.bf16 %v424_v46, %v423_v45  ;;  %v425_v48 = vld [vmem:[#allocation13 + $0x30] sm:$0xff]  ;;  %v428_v51 = vld [vmem:[#allocation13 + $0x48] sm:$0xff] }
  0x77   :  { %214 = vst [vmem:[#allocation14 + $0x8] sm:$0xff] %v212_v50  ;;  %318 = vmatprep.mubr.f32.mxu0 %v212_v50  ;;  %766 = vmatpush3.bf16.msra.mxu1 %v765_v11  ;;  %v426_v49 = vld [vmem:[#allocation13 + $0x38] sm:$0xff]  ;;  %v429_v53 = vld [vmem:[#allocation13 + $0x50] sm:$0xff]  ;;  %v431_v56 = vld [vmem:[#allocation13 + $0x60] sm:$0xff] }
  0x78   :  { %202 = vrot.lane.b32.xlu0 %v200_v37, %s997_s27  ;;  %767 = vmatprep.subr.bf16.mxu1 %v996_v38  ;;  %v777_v37 = vpack.c.bf16 %v340_v36, %v339_v35  ;;  %v789_v50 = vpack.c.bf16 %v426_v49, %v425_v48  ;;  %v430_v54 = vld [vmem:[#allocation13 + $0x58] sm:$0xff]  ;;  %v432_v57 = vld [vmem:[#allocation13 + $0x68] sm:$0xff]  ;;  %v433_v1 = vld [vmem:[#allocation13 + $0x70] sm:$0xff] }
  0x79   :  { %746 = vmatpush3.bf16.msra.mxu0 %v745_v5  ;;  %v795_v55 = vpack.c.bf16 %v430_v54, %v429_v53  ;;  %v798_v58 = vpack.c.bf16 %v432_v57, %v431_v56  ;;  %v581_v60 = vld [vmem:[%s1235_s5] ss:$0 sm:$0xff]  ;;  %v434_v2 = vld [vmem:[#allocation13 + $0x78] sm:$0xff]  ;;  %s519_s5 = sshll.u32 %s999_s12, 4  ;;  %s520_s5 = int_to_ptr.vmem [resolvable:$true] %s519_s5 }
  0x7a   :  { %748 = vmatprep.subr.bf16.mxu0 %v747_v6  ;;  %v801_v3 = vpack.c.bf16 %v434_v2, %v433_v1  ;;  %v582_v4 = vld [vmem:[%s1237_s7] ss:$0 sm:$0xff]  ;;  %s920_s14 = scalar_lea.vmem %s520_s5, 256  ;;  %p925_p8 = scmp.lt.s32.totalorder %s520_s5, %s520_s5 }
  0x7b   :  { %769 = vmatpush3.bf16.msra.mxu1 %v768_v18  ;;  %p921_p7 = scmp.ne.s32.totalorder %s520_s5, %s920_s14  ;;  %p926_p9 = scmp.lt.s32.totalorder %s920_s14, %s920_s14 }
  0x7c   :  { %770 = vmatprep.subr.bf16.mxu1 %v996_v38 }
  0x7d   :  { %750 = vmatpush3.bf16.msra.mxu0 %v749_v14  ;;  %p927_p10 = por %p926_p9, %p925_p8 }
  0x7e   :  { %752 = vmatprep.subr.bf16.mxu0 %v751_v15 }
  0x7f   :  { %772 = vmatpush3.bf16.msra.mxu1 %v771_v22  ;;  %p928_p11 = pnand %p927_p10, %p921_p7 }
  0x80   :  { %773 = vmatprep.subr.bf16.mxu1 %v996_v38 }
  0x81   :  { %754 = vmatpush3.bf16.msra.mxu0 %v753_v21 }
  0x82   :  { %779 = vmatprep.subr.bf16.mxu0 %v996_v38 }
  0x83   :  { %775 = vmatpush3.bf16.msra.mxu1 %v774_v33 }
  0x84   :  { %776 = vmatprep.subr.bf16.mxu1 %v996_v38 }
  0x87   :  { %778 = vmatpush3.bf16.msra.mxu1 %v777_v37 }
  0xde   :  { %v161_v23 = vpop.permute.xlu0 %160  ;;  %v175_v24 = vpop.permute.xlu1 %174 }
  0xdf   :  { %164 = vst.msk [vmem:[#allocation4] sm:$0xff] %vm163_vm3, %v161_v23 }
  0xe2   :  { %v168_v25 = vpop.permute.xlu0 %167  ;;  %v182_v26 = vpop.permute.xlu1 %181 }
  0xe3   :  { %171 = vst.msk [vmem:[#allocation4] sm:$0xff] %vm170_vm4, %v168_v25 }
  0xe4   :  { %178 = vst.msk [vmem:[#allocation4] sm:$0xff] %vm177_vm5, %v175_v24 }
  0xe5   :  { %185 = vst.msk [vmem:[#allocation4] sm:$0xff] %vm184_vm6, %v182_v26 }
  0xe6   :  { %v189_v27 = vpop.permute.xlu0 %188  ;;  %v196_v28 = vpop.permute.xlu1 %195 }
  0xe7   :  { %192 = vst.msk [vmem:[#allocation4] sm:$0xff] %vm191_vm7, %v189_v27 }
  0xe8   :  { %199 = vst.msk [vmem:[#allocation4] sm:$0xff] %vm198_vm8, %v196_v28 }
  0xea   :  { %v203_v29 = vpop.permute.xlu0 %202 }
  0xeb   :  { %206 = vst.msk [vmem:[#allocation4] sm:$0xff] %vm205_vm9, %v203_v29 }
  0xf2   :  { %v211_v30 = vld [vmem:[#allocation4] sm:$0xff] }
  0xf3   :  { %319 = vmatmul.mubr.f32.vlgmr.msra.gmra.mrb[0].mxu0 %v211_v30  ;;  %213 = vst [vmem:[#allocation14] sm:$0xff] %v211_v30 }
  0xf4   :  { %720 = vmatprep.mubr.msk.f32.mxu0 %vm998_vm10, %v993_v34  ;;  %781 = vmatpush3.bf16.msra.mxu0 %v780_v42  ;;  %v427_v34 = vld [vmem:[#allocation13 + $0x40] sm:$0xff] }
  0xf5   :  { %782 = vmatprep.subr.bf16.mxu0 %v996_v38  ;;  %v792_v52 = vpack.c.bf16 %v428_v51, %v427_v34 }
  0xf8   :  { %784 = vmatpush3.bf16.msra.mxu0 %v783_v44 }
  0xf9   :  { %785 = vmatprep.subr.bf16.mxu0 %v996_v38 }
  0xfc   :  { %787 = vmatpush3.bf16.msra.mxu0 %v786_v47 }
  0xfd   :  { %788 = vmatprep.subr.bf16.mxu0 %v996_v38 }
 0x100   :  { %790 = vmatpush3.bf16.msra.mxu0 %v789_v50 }
 0x101   :  { %791 = vmatprep.subr.bf16.mxu0 %v996_v38 }
 0x104   :  { %793 = vmatpush3.bf16.msra.mxu0 %v792_v52 }
 0x105   :  { %794 = vmatprep.subr.bf16.mxu0 %v996_v38 }
 0x108   :  { %796 = vmatpush3.bf16.msra.mxu0 %v795_v55 }
 0x109   :  { %797 = vmatprep.subr.bf16.mxu0 %v996_v38 }
 0x10c   :  { %799 = vmatpush3.bf16.msra.mxu0 %v798_v58 }
 0x10d   :  { %800 = vmatprep.subr.bf16.mxu0 %v996_v38 }
 0x110   :  { %802 = vmatpush3.bf16.msra.mxu0 %v801_v3 }
 0x1c6   :  { %v616_v59 = vpop.f32.mrb[0].mxu0 }
 0x1c7   :  { %v617_v61 = vpop.f32.mrb[1].mxu0 }
 0x1c8   :  { %v618_v62 = vadd.f32 %v617_v61, %v616_v59 }
 0x1ca   :  { %v321_v63 = vadd.f32 %v618_v62, %v581_v60 }
 0x1cc   :  { %v324_v0 = vmax.f32 %v321_v63, 0.0 }
 0x1ce   :  { %686 = vmatmul.mubr.f32.vlgmr.msra.gmra.mrb[0].mxu1 %v324_v0 }
 0x2a1   :  { %v414_v5 = vpop.f32.mrb[0].mxu1 }
 0x2a2   :  { %v415_v38 = vadd.f32 %v582_v4, %v414_v5  ;;  %v687_v6 = vpop.f32.mrb[1].mxu1 }
 0x2a4   :  { %v418_v7 = vmax.f32 %v415_v38, 0.0 }
 0x2a6   :  { %721 = vmatmul.mubr.f32.vlgmr.msra.gmra.mrb[2].mxu0 %v418_v7 }
 0x2a7   :  { %931 = shalt.err (!%p928_p11)
}
 0x2a8   :  { %s932_s15 = scalar_lea.hbm %s1240_s10, 256 }
 0x2a9   :  { %p933_p12 = scmp.ne.s32.totalorder %s1240_s10, %s932_s15  ;;  %p936_p13 = scmp.lt.u32.totalorder %s932_s15, %s1240_s10 }
 0x2ab   :  { %p938_p0 = pnand %p936_p13, %p933_p12 }
 0x2ad   :  { %941 = shalt.err (!%p938_p0)
}
 0x2ae   :  { %522 = dma.vmem_to_hbm [thread:$0]  %s520_s5, 256, %s1240_s10, [#allocation10]   ;;  %v583_v8 = vld [vmem:[%s1239_s9] ss:$0 sm:$0xff] }
 0x2af   :  { %s1000_s13 = smov [#allocation15]  }
 0x2b0   :  { %s529_s28 = sshll.u32 %s1000_s13, 4  ;;  %s530_s28 = int_to_ptr.vmem [resolvable:$true] %s529_s28 }
 0x2b1   :  { %s942_s18 = scalar_lea.vmem %s530_s28, 128  ;;  %p947_p2 = scmp.lt.s32.totalorder %s530_s28, %s530_s28 }
 0x2b2   :  { %p943_p1 = scmp.ne.s32.totalorder %s530_s28, %s942_s18  ;;  %p948_p3 = scmp.lt.s32.totalorder %s942_s18, %s942_s18 }
 0x2b4   :  { %p949_p4 = por %p948_p3, %p947_p2 }
 0x2b6   :  { %p950_p5 = pnand %p949_p4, %p943_p1 }
 0x379   :  { %v508_v9 = vpop.f32.mrb[2].mxu0 }
 0x37a   :  { %v509_v10 = vadd.f32 %v583_v8, %v508_v9  ;;  %v722_v11 = vpop.f32.mrb[3].mxu0 }
 0x37c   :  { %512 = vst [vmem:[#allocation15] sm:$0xff] %v509_v10 }
 0x37d   :  { %953 = shalt.err (!%p950_p5)
}
 0x37e   :  { %s954_s0 = scalar_lea.hbm %s1241_s11, 128 }
 0x37f   :  { %p955_p6 = scmp.ne.s32.totalorder %s1241_s11, %s954_s0  ;;  %p958_p7 = scmp.lt.u32.totalorder %s954_s0, %s1241_s11 }
 0x381   :  { %p960_p8 = pnand %p958_p7, %p955_p6 }
 0x383   :  { %963 = shalt.err (!%p960_p8)
}
 0x384   :  { %532 = dma.vmem_to_hbm [thread:$0]  %s530_s28, 128, %s1241_s11, [#allocation16]  }
 0x385   :  { %974 = dma.done.wait [#allocation10], 256  }
 0x386   :  { %975 = vsyncadd [#allocation10], 4294967040 }
 0x387   :  { %976 = dma.done.wait [#allocation16], 128  }
 0x388   :  { %977 = vsyncadd [#allocation16], 4294967168 }
 0x389   :  { %539 = vsyncpa [#allocation9], 1 }
 0x38a   :  { %540 = vsyncpa [#allocation12], 1 }
 0x38b   :  { %541 = vsyncpa [#allocation10], 1 }
 0x38c   :  { %542 = vsyncpa [#allocation16], 1 }

</bundles_post_ra>
